<compile_context>
chip_gen: v6e
topology: v6e:2x2x1
jax: 0.10.0
libtpu: 0.0.40
codegen_flags: <defaults>
</compile_context>

<pallas_src>
import jax
import jax.numpy as jnp
import numpy as np
from jax.experimental import pallas as pl
from jax.experimental.pallas import tpu as pltpu

_SMALL_BANK_BYTES = 1 << 20      # below this, a kernel launch is pure overhead
_TARGET_BLOCK_BYTES = 4 << 20    # ~4 MiB blocks keep per-step overhead < ~10%
_LANES = 128
_SUBLANES = 8


def _copy_kernel(src_ref, dst_ref):
    # The module owns exactly one tensor and its forward does no compute; the
    # only meaningful Pallas op is a VMEM-resident identity materialization.
    dst_ref[...] = src_ref[...]


@jax.jit
def _pallas_materialize(patterns):
    """Tiled, lane-dense identity copy of the pattern bank through VMEM.

    HBM traffic model: 2x bank bytes (HBM->VMEM DMA in, VMEM->HBM DMA out).
    The writeback cannot be elided by aliasing; this exists only as a debug
    probe / template for a future real consumer of the bank.
    """
    n, d = patterns.shape
    total = n * d
    itemsize = np.dtype(patterns.dtype).itemsize

    # Lane-dense layout: pad the flat length to a multiple of 8*128 so every
    # vreg is a full (8, 128) tile -> unmasked vst, no vst.msk partial stores.
    vreg_elems = _SUBLANES * _LANES
    padded_total = ((total + vreg_elems - 1) // vreg_elems) * vreg_elems
    flat = patterns.reshape(-1)
    if padded_total != total:
        flat = jnp.pad(flat, (0, padded_total - total))
    rows = padded_total // _LANES

    # ~4 MiB blocks, rows a multiple of 8. Double-buffered in+out ~= 16 MiB
    # peak VMEM: fits v5e/v6e (128 MiB physical) and v7x (64 MiB physical)
    # under the explicit 32 MiB scoped limit set below.
    max_block_rows = max(
        _SUBLANES,
        (_TARGET_BLOCK_BYTES // (_LANES * itemsize)) // _SUBLANES * _SUBLANES,
    )
    block_rows = min(rows, max_block_rows)
    rows_padded = ((rows + block_rows - 1) // block_rows) * block_rows
    if rows_padded != rows:
        flat = jnp.pad(flat, (0, (rows_padded - rows) * _LANES))
        rows = rows_padded
    flat = flat.reshape(rows, _LANES)

    out = pl.pallas_call(
        _copy_kernel,
        out_shape=jax.ShapeDtypeStruct((rows, _LANES), patterns.dtype),
        grid=(rows // block_rows,),
        in_specs=[pl.BlockSpec((block_rows, _LANES), lambda i: (i, 0))],
        out_specs=pl.BlockSpec((block_rows, _LANES), lambda i: (i, 0)),
        compiler_params=pltpu.CompilerParams(
            # "parallel": v7x's two TensorCores split the copy; harmless on
            # single-core v5e/v6e.
            dimension_semantics=("parallel",),
            vmem_limit_bytes=32 << 20,
        ),
    )(flat)

    return out.reshape(-1)[:total].reshape(n, d)


def materialize_patterns(patterns: jax.Array, *, force_kernel: bool = False) -> jax.Array:
    """Debug-only helper: pass the pattern bank through a Pallas copy kernel.

    For banks under ~1 MiB this returns the input directly — no kernel launch,
    no HBM traffic — because the fixed per-call overhead (~0.35 us/step plus
    custom-call dispatch) dwarfs the nanoseconds of actual data movement.
    Set force_kernel=True to exercise the tiled Pallas path regardless of size.
    Deliberately NOT called from forward() (which is a no-op, matching the
    reference module).
    """
    size_bytes = patterns.size * np.dtype(patterns.dtype).itemsize
    if size_bytes < _SMALL_BANK_BYTES and not force_kernel:
        return patterns
    return _pallas_materialize(patterns)


class PatternMinerJax:
    """JAX/Pallas analogue of PL4A's PatternMiner.

    Holds a (num_pattern, pattern_dim) pattern bank initialized from a normal
    distribution (deterministic PRNGKey stands in for torch.randn).
    """

    def __init__(self, pattern_dim: int = 256, num_pattern: int = 20,
                 key: jax.Array | None = None, dtype=jnp.float32):
        if key is None:
            key = jax.random.PRNGKey(0)
        # torch.randn default is f32. If the bank's real consumer is an MXU
        # matmul, pass dtype=jnp.bfloat16 (halves HBM traffic, native MXU
        # input dtype on v6e/v7x).
        self.patterns = jax.random.normal(
            key, (num_pattern, pattern_dim), dtype=dtype
        )

    def forward(self):
        # Reference forward() is `return` -> returns None, no compute. The
        # Pallas kernel is intentionally NOT invoked here; use
        # materialize_patterns() explicitly to exercise the pattern bank.
        # TODO(synk): reference forward is a no-op; nothing else to translate.
        return None


if __name__ == "__main__":
    key = jax.random.PRNGKey(0)
    # Shapes consistent with the module's __init__ defaults.
    num_pattern, pattern_dim = 20, 256

    miner = PatternMinerJax(pattern_dim=pattern_dim, num_pattern=num_pattern,
                            key=key)

    # Faithful forward: returns None, launches nothing.
    assert miner.forward() is None

    ref = np.asarray(miner.patterns)

    # Default path for the tiny 20 KiB bank: pure pass-through, zero launches.
    out_fast = materialize_patterns(miner.patterns)
    assert out_fast is miner.patterns

    # Force the Pallas path once to exercise the tiled, lane-dense copy.
    out = jax.block_until_ready(
        materialize_patterns(miner.patterns, force_kernel=True))
    assert out.shape == (num_pattern, pattern_dim)
    assert out.dtype == miner.patterns.dtype
    np.testing.assert_array_equal(np.asarray(out), ref)

    # Non-multiple-of-128 bank exercises the padded lane-dense fallback
    # (pads to full (8, 128) vreg tiles, strips padding after the copy).
    odd = jax.random.normal(jax.random.PRNGKey(1), (6, 200), dtype=jnp.float32)
    out_odd = jax.block_until_ready(
        materialize_patterns(odd, force_kernel=True))
    assert out_odd.shape == (6, 200)
    np.testing.assert_array_equal(np.asarray(out_odd), np.asarray(odd))

    # No donation / aliasing: the module's parameter is still readable.
    np.testing.assert_array_equal(np.asarray(miner.patterns), ref)

    print("KERNEL_OK")
</pallas_src>

<mosaic_0001>
module attributes {stable_mosaic.version = 11 : i64} {
  func.func @_copy_kernel(%arg0: i32, %arg1: memref<40x128xf32, #tpu.memory_space<vmem>>, %arg2: memref<40x128xf32, #tpu.memory_space<vmem>>) attributes {dimension_semantics = [#tpu.dimension_semantics<parallel>], iteration_bounds = array<i64: 1>, scalar_prefetch = 0 : i64, scratch_operands = 0 : i64, tpu.core_type = #tpu.core_type<tc>, window_params = [{transform_indices = @transform_0, window_bounds = array<i64: 40, 128>}, {transform_indices = @transform_1, window_bounds = array<i64: 40, 128>}]} {
    %c0 = arith.constant 0 : index
    %c0_0 = arith.constant 0 : index
    %0 = vector.load %arg1[%c0, %c0_0] : memref<40x128xf32, #tpu.memory_space<vmem>>, vector<40x128xf32>
    %c0_1 = arith.constant 0 : index
    %c0_2 = arith.constant 0 : index
    %1 = vector.load %arg2[%c0_1, %c0_2] : memref<40x128xf32, #tpu.memory_space<vmem>>, vector<40x128xf32>
    tpu.vector_store %arg2[%c0_1, %c0_2], %0 {strides = array<i32>} : memref<40x128xf32, #tpu.memory_space<vmem>>, vector<40x128xf32>,
    return
  }
  func.func @transform_0(%arg0: i32) -> (i32, i32) {
    %c0_i32 = arith.constant 0 : i32
    %c0_i32_0 = arith.constant 0 : i32
    return %arg0, %c0_i32 : i32, i32
  }
  func.func @transform_1(%arg0: i32) -> (i32, i32) {
    %c0_i32 = arith.constant 0 : i32
    %c0_i32_0 = arith.constant 0 : i32
    return %arg0, %c0_i32 : i32, i32
  }
}

</mosaic_0001>

<bundles_post_ra>
// kernel: _pallas_materialize.1
= control target key start
LH: loop header
LB: loop body
LE: loop exit
PB: predicated region body
PF: predicated region fallthrough
CT: control target
= control target key end

     0   :  { %s62_s0 = inlined_call_operand.vmem [shape: f32[40,128], index: 0, kind: input, shape index: {}]   ;;  %s63_s1 = inlined_call_operand.vmem [shape: f32[40,128], index: 1, kind: output, shape index: {}]  }
   0x1   :  { %v8_v0 = vld [vmem:[%s62_s0] sm:$0xff]  ;;  %v9_v1 = vld [vmem:[%s62_s0 + $0x8] sm:$0xff]  ;;  %v10_v2 = vld [vmem:[%s62_s0 + $0x10] sm:$0xff] }
   0x2   :  { %13 = vst [vmem:[%s63_s1] sm:$0xff] %v8_v0  ;;  %14 = vst [vmem:[%s63_s1 + $0x8] sm:$0xff] %v9_v1  ;;  %v11_v3 = vld [vmem:[%s62_s0 + $0x18] sm:$0xff]  ;;  %v12_v4 = vld [vmem:[%s62_s0 + $0x20] sm:$0xff] }
   0x3   :  { %15 = vst [vmem:[%s63_s1 + $0x10] sm:$0xff] %v10_v2  ;;  %16 = vst [vmem:[%s63_s1 + $0x18] sm:$0xff] %v11_v3 }
   0x4   :  { %17 = vst [vmem:[%s63_s1 + $0x20] sm:$0xff] %v12_v4 }

</bundles_post_ra>
